<compile_context>
chip_gen: v6e
topology: v6e:2x2x1
jax: 0.10.0
libtpu: 0.0.40
codegen_flags: <defaults>
</compile_context>

<pallas_src>
import jax
import jax.numpy as jnp
from jax import lax
from jax.experimental import pallas as pl
from jax.experimental.pallas import tpu as pltpu


# ---------------------------------------------------------------------------
# Pallas kernel: 1 MXU matmul / image + roll&mask taps + pre-sigmoid peak
# ---------------------------------------------------------------------------
def _make_detect_kernel(bt, C, H, W, NP):
    HW = H * W
    w_is_pow2 = (W & (W - 1)) == 0
    w_shift = max(W.bit_length() - 1, 0)

    # Static tap table: tap t = dy*3 + dx.  Rolling the matmul output by
    # r_t = ((1-dy)*W + (1-dx)) mod HW makes column p read logical position
    # p + (dy-1)*W + (dx-1); the border mask zeroes columns whose shifted
    # (y, x) falls outside the image (the 'same'-conv zero halo).
    taps = []
    for dy in range(3):
        for dx in range(3):
            taps.append((dy * 3 + dx, ((1 - dy) * W + (1 - dx)) % HW, dy, dx))

    def kernel(x_ref, w_ref, b_ref, out_ref, mbuf, ibuf):
        # x_ref  : (bt, C, HW)  f32  raw images, lane-dense, no halo/pre-cast
        # w_ref  : (9*NP, C)    bf16 tap-major stacked conv weights (resident)
        # b_ref  : (NP, 1)      f32  conv bias (resident)
        # out_ref: (bt, NP, 3)  f32  packed [probs | cx | cy]
        # mbuf   : (bt, NP, 1)  f32  per-image peak logit  (VMEM scratch)
        # ibuf   : (bt, NP, 1)  i32  per-image peak index  (VMEM scratch)

        # ---- hoisted once per grid step (not per image) -------------------
        w_all = w_ref[...]
        bias = b_ref[...]
        pos = lax.broadcasted_iota(jnp.int32, (NP, HW), 1)      # argmax index
        pos1 = lax.broadcasted_iota(jnp.int32, (1, HW), 1)
        if w_is_pow2:
            xc = pos1 & (W - 1)
            yc = pos1 >> w_shift
        else:
            xc = pos1 % W
            yc = pos1 // W
        masks = []
        for _, _, dy, dx in taps:
            conds = []
            if dx == 0:
                conds.append(xc >= 1)
            elif dx == 2:
                conds.append(xc <= W - 2)
            if dy == 0:
                conds.append(yc >= 1)
            elif dy == 2:
                conds.append(yc <= H - 2)
            if not conds:                       # center tap: no border mask
                masks.append(None)
                continue
            c = conds[0]
            for extra in conds[1:]:
                c = jnp.logical_and(c, extra)
            masks.append(c.astype(jnp.float32))

        # ---- per-image work -----------------------------------------------
        def body(bl, carry):
            xb = x_ref[bl].astype(jnp.bfloat16)                  # (C, HW)
            # Single bf16 MXU call per image: 9 taps stacked on the M axis.
            y = jnp.dot(w_all, xb, preferred_element_type=jnp.float32)
            logits = y[4 * NP:5 * NP]                            # center tap
            for (t, r, dy, dx), m in zip(taps, masks):
                if m is None:
                    continue
                slab = y[t * NP:(t + 1) * NP]                    # 8-row aligned
                logits = logits + m * pltpu.roll(slab, r, axis=1)
            logits = logits + bias                               # (NP, HW) f32

            # Peak search on the *pre-sigmoid* logits (sigmoid is monotonic).
            mv = jnp.max(logits, axis=1, keepdims=True)          # (NP, 1)
            first = jnp.min(jnp.where(logits >= mv, pos, HW),
                            axis=1, keepdims=True)               # (NP, 1) i32
            mbuf[bl] = mv
            ibuf[bl] = first
            return carry

        if bt == 1:
            body(0, 0)
        else:
            lax.fori_loop(0, bt, body, 0, unroll=2)

        # ---- batched epilogue: one packed store per grid step --------------
        mall = mbuf[...]                                         # (bt, NP, 1)
        iall = ibuf[...]
        probs = jax.nn.sigmoid(mall)                             # EUP: bt*NP vals
        if w_is_pow2:
            cx = (iall & (W - 1)).astype(jnp.float32)
            cy = (iall >> w_shift).astype(jnp.float32)
        else:
            cx = (iall % W).astype(jnp.float32)
            cy = (iall // W).astype(jnp.float32)
        lane = lax.broadcasted_iota(jnp.int32, (bt, NP, 3), 2)
        packed = jnp.where(
            lane == 0, jnp.broadcast_to(probs, (bt, NP, 3)),
            jnp.where(lane == 1, jnp.broadcast_to(cx, (bt, NP, 3)),
                      jnp.broadcast_to(cy, (bt, NP, 3))))
        out_ref[...] = packed

    return kernel


# ---------------------------------------------------------------------------
# Wrapper: generation-gated block sizing, resident weights, packed output
# ---------------------------------------------------------------------------
def _vmem_capacity_bytes():
    try:
        info = pltpu.get_tpu_info()
        return int(getattr(info, "vmem_capacity_bytes", 64 << 20))
    except Exception:
        return 64 << 20


def _pick_block_b(B, C, HW, NP, in_itemsize, vmem_cap):
    # Budget the double-buffered f32 input block plus the per-image
    # (9*NP, HW) f32 intermediate against the generation's VMEM
    # (v6e: 128 MiB, v7x: 64 MiB; v5e kept conservative - lowest HBM BW).
    budget = min(vmem_cap // 8, 8 << 20)
    per_img = 2 * C * HW * in_itemsize + 9 * NP * HW * 4
    cap = max(1, budget // max(per_img, 1))
    best = 1
    best_even = None
    for d in range(1, min(B, cap) + 1):
        if B % d:
            continue
        steps = B // d
        if steps >= 2:
            best = d                      # largest divisor with >= 2 steps
            if steps % 2 == 0:
                best_even = d             # prefer an even grid (v7x: 2 TCs)
    if best_even is not None:
        best = best_even
    return best


def sym_feat_extractor_forward(imgs, conv_w, conv_b, *, block_b=None):
    """imgs: (B, C, H, W) NCHW f32; conv_w: (n_obj, C, 3, 3); conv_b: (n_obj,).
    Returns (img_idx, obj_id, center_x, center_y, probs), each (B*n_obj,)."""
    B, C, H, W = imgs.shape
    n_obj = conv_w.shape[0]
    HW = H * W
    NP = ((n_obj + 7) // 8) * 8           # pad classes to f32 sublane count

    vmem_cap = _vmem_capacity_bytes()
    if block_b is None:
        block_b = _pick_block_b(B, C, HW, NP, imgs.dtype.itemsize, vmem_cap)
    assert B % block_b == 0

    # Free reshape (collapses two contiguous minor dims): images stay f32 in
    # HBM, lane-dense on H*W.  No wrapper-side pad / cast pass.
    x_flat = imgs.reshape(B, C, HW)

    # Tap-major stacked weights (row = tap*NP + o), zero-padded to NP rows.
    wt = jnp.transpose(conv_w, (2, 3, 0, 1)).reshape(9, n_obj, C)
    wt = jnp.pad(wt, ((0, 0), (0, NP - n_obj), (0, 0)))
    w2 = wt.reshape(9 * NP, C).astype(jnp.bfloat16)
    b2 = jnp.pad(conv_b, (0, NP - n_obj)).reshape(NP, 1).astype(jnp.float32)

    kernel = _make_detect_kernel(block_b, C, H, W, NP)

    packed = pl.pallas_call(
        kernel,
        out_shape=jax.ShapeDtypeStruct((B, NP, 3), jnp.float32),
        grid_spec=pltpu.PrefetchScalarGridSpec(
            num_scalar_prefetch=0,
            grid=(B // block_b,),
            in_specs=[
                pl.BlockSpec((block_b, C, HW), lambda i: (i, 0, 0)),
                pl.BlockSpec((9 * NP, C), lambda i: (0, 0)),    # resident
                pl.BlockSpec((NP, 1), lambda i: (0, 0)),        # resident
            ],
            out_specs=pl.BlockSpec((block_b, NP, 3), lambda i: (i, 0, 0)),
            scratch_shapes=[
                pltpu.VMEM((block_b, NP, 1), jnp.float32),
                pltpu.VMEM((block_b, NP, 1), jnp.int32),
            ],
        ),
        compiler_params=pltpu.CompilerParams(
            dimension_semantics=("parallel",),
            vmem_limit_bytes=int(max(32 << 20, min(vmem_cap // 2, 64 << 20))),
        ),
    )(x_flat, w2, b2)

    packed = packed[:, :n_obj, :]          # drop padded detector rows
    probs = packed[:, :, 0].reshape(-1)
    cx = packed[:, :, 1].reshape(-1)
    cy = packed[:, :, 2].reshape(-1)
    img_idx = jnp.repeat(jnp.arange(B, dtype=jnp.int32), n_obj)
    obj_id = jnp.tile(jnp.arange(n_obj, dtype=jnp.int32), B)
    return (img_idx, obj_id, cx, cy, probs)


# ---------------------------------------------------------------------------
# Pure-JAX reference (same bf16 operand rounding, f32 accumulation)
# ---------------------------------------------------------------------------
def _reference(imgs, conv_w, conv_b, compute_dtype=jnp.bfloat16):
    B, C, H, W = imgs.shape
    n_obj = conv_w.shape[0]
    hm = lax.conv_general_dilated(
        imgs.astype(compute_dtype), conv_w.astype(compute_dtype),
        window_strides=(1, 1), padding="SAME",
        dimension_numbers=("NCHW", "OIHW", "NCHW"),
        preferred_element_type=jnp.float32)
    hm = jax.nn.sigmoid(hm + conv_b.astype(jnp.float32)[None, :, None, None])
    flat = hm.reshape(B, n_obj, H * W)
    probs = flat.max(-1)
    idx = flat.argmax(-1)
    cx = (idx % W).astype(jnp.float32)
    cy = (idx // W).astype(jnp.float32)
    img_idx = jnp.repeat(jnp.arange(B, dtype=jnp.int32), n_obj)
    obj_id = jnp.tile(jnp.arange(n_obj, dtype=jnp.int32), B)
    return (img_idx, obj_id, cx.reshape(-1), cy.reshape(-1),
            probs.reshape(-1), flat)


if __name__ == "__main__":
    B, C_in, H, W = 2, 4, 16, 16
    n_obj = 4

    key = jax.random.PRNGKey(0)
    k_img, k_w, k_b = jax.random.split(key, 3)
    imgs = jax.random.normal(k_img, (B, C_in, H, W), dtype=jnp.float32)
    conv_w = 0.1 * jax.random.normal(k_w, (n_obj, C_in, 3, 3), dtype=jnp.float32)
    conv_b = 0.1 * jax.random.normal(k_b, (n_obj,), dtype=jnp.float32)

    out = sym_feat_extractor_forward(imgs, conv_w, conv_b)
    out = jax.block_until_ready(out)
    img_idx, obj_id, cx, cy, probs = out

    r_img_idx, r_obj_id, r_cx, r_cy, r_probs, r_heat = _reference(
        imgs, conv_w, conv_b)

    assert probs.shape == (B * n_obj,) and probs.dtype == jnp.float32
    assert cx.shape == (B * n_obj,) and cy.shape == (B * n_obj,)
    assert bool((img_idx == r_img_idx).all()) and bool((obj_id == r_obj_id).all())
    assert jnp.allclose(probs, r_probs, atol=2e-4, rtol=2e-4)
    # Robust peak-location check: argmax ties/near-ties can legally differ
    # under differing f32 accumulation order, so instead of comparing cx/cy
    # directly, require the reference heatmap value at the kernel's (cy, cx)
    # to equal the reference peak value.
    kidx = (cy.astype(jnp.int32) * W + cx.astype(jnp.int32)).reshape(B, n_obj, 1)
    at_k = jnp.take_along_axis(r_heat, kidx, axis=2)[..., 0].reshape(-1)
    assert jnp.allclose(at_k, r_probs, atol=2e-4, rtol=2e-4)
    assert bool((cx >= 0).all()) and bool((cx <= W - 1).all())
    assert bool((cy >= 0).all()) and bool((cy <= H - 1).all())

    print("KERNEL_OK")
</pallas_src>

<mosaic_0001>
module attributes {stable_mosaic.version = 11 : i64} {
  func.func @kernel(%arg0: i32, %arg1: memref<1x4x256xf32, #tpu.memory_space<vmem>>, %arg2: memref<72x4xbf16, #tpu.memory_space<vmem>>, %arg3: memref<8x1xf32, #tpu.memory_space<vmem>>, %arg4: memref<1x8x3xf32, #tpu.memory_space<vmem>>, %arg5: memref<1x8x1xf32, #tpu.memory_space<vmem>>, %arg6: memref<1x8x1xi32, #tpu.memory_space<vmem>>) attributes {dimension_semantics = [#tpu.dimension_semantics<parallel>], iteration_bounds = array<i64: 2>, scalar_prefetch = 0 : i64, scratch_operands = 2 : i64, tpu.core_type = #tpu.core_type<tc>, window_params = [{transform_indices = @transform_0, window_bounds = array<i64: 1, 4, 256>}, {pipeline_mode = #tpu.pipeline_mode<synchronous>, transform_indices = @transform_1, window_bounds = array<i64: 72, 4>}, {pipeline_mode = #tpu.pipeline_mode<synchronous>, transform_indices = @transform_2, window_bounds = array<i64: 8, 1>}, {transform_indices = @transform_3, window_bounds = array<i64: 1, 8, 3>}]} {
    %c0 = arith.constant 0 : index
    %c0_0 = arith.constant 0 : index
    %0 = vector.load %arg2[%c0, %c0_0] : memref<72x4xbf16, #tpu.memory_space<vmem>>, vector<72x4xbf16>
    %c0_1 = arith.constant 0 : index
    %c0_2 = arith.constant 0 : index
    %1 = vector.load %arg3[%c0_1, %c0_2] : memref<8x1xf32, #tpu.memory_space<vmem>>, vector<8x1xf32>
    %2 = tpu.iota {dimensions = array<i32: 1>} : vector<8x256xi32>
    %3 = tpu.iota {dimensions = array<i32: 1>} : vector<1x256xi32>
    %c15_i32 = arith.constant 15 : i32
    %4 = vector.broadcast %c15_i32 : i32 to vector<1x256xi32>
    %5 = arith.andi %3, %4 : vector<1x256xi32>
    %c4_i32 = arith.constant 4 : i32
    %6 = vector.broadcast %c4_i32 : i32 to vector<1x256xi32>
    %7 = arith.shrsi %3, %6 : vector<1x256xi32>
    %c1_i32 = arith.constant 1 : i32
    %8 = vector.broadcast %c1_i32 : i32 to vector<1x256xi32>
    %9 = arith.cmpi sge, %5, %8 : vector<1x256xi32>
    %c1_i32_3 = arith.constant 1 : i32
    %10 = vector.broadcast %c1_i32_3 : i32 to vector<1x256xi32>
    %11 = arith.cmpi sge, %7, %10 : vector<1x256xi32>
    %12 = arith.andi %9, %11 : vector<1x256xi1>
    %13 = arith.extui %12 : vector<1x256xi1> to vector<1x256xi32>
    %14 = arith.sitofp %13 : vector<1x256xi32> to vector<1x256xf32>
    %c1_i32_4 = arith.constant 1 : i32
    %15 = vector.broadcast %c1_i32_4 : i32 to vector<1x256xi32>
    %16 = arith.cmpi sge, %7, %15 : vector<1x256xi32>
    %17 = arith.extui %16 : vector<1x256xi1> to vector<1x256xi32>
    %18 = arith.sitofp %17 : vector<1x256xi32> to vector<1x256xf32>
    %c14_i32 = arith.constant 14 : i32
    %19 = vector.broadcast %c14_i32 : i32 to vector<1x256xi32>
    %20 = arith.cmpi sle, %5, %19 : vector<1x256xi32>
    %c1_i32_5 = arith.constant 1 : i32
    %21 = vector.broadcast %c1_i32_5 : i32 to vector<1x256xi32>
    %22 = arith.cmpi sge, %7, %21 : vector<1x256xi32>
    %23 = arith.andi %20, %22 : vector<1x256xi1>
    %24 = arith.extui %23 : vector<1x256xi1> to vector<1x256xi32>
    %25 = arith.sitofp %24 : vector<1x256xi32> to vector<1x256xf32>
    %c1_i32_6 = arith.constant 1 : i32
    %26 = vector.broadcast %c1_i32_6 : i32 to vector<1x256xi32>
    %27 = arith.cmpi sge, %5, %26 : vector<1x256xi32>
    %28 = arith.extui %27 : vector<1x256xi1> to vector<1x256xi32>
    %29 = arith.sitofp %28 : vector<1x256xi32> to vector<1x256xf32>
    %c14_i32_7 = arith.constant 14 : i32
    %30 = vector.broadcast %c14_i32_7 : i32 to vector<1x256xi32>
    %31 = arith.cmpi sle, %5, %30 : vector<1x256xi32>
    %32 = arith.extui %31 : vector<1x256xi1> to vector<1x256xi32>
    %33 = arith.sitofp %32 : vector<1x256xi32> to vector<1x256xf32>
    %c1_i32_8 = arith.constant 1 : i32
    %34 = vector.broadcast %c1_i32_8 : i32 to vector<1x256xi32>
    %35 = arith.cmpi sge, %5, %34 : vector<1x256xi32>
    %c14_i32_9 = arith.constant 14 : i32
    %36 = vector.broadcast %c14_i32_9 : i32 to vector<1x256xi32>
    %37 = arith.cmpi sle, %7, %36 : vector<1x256xi32>
    %38 = arith.andi %35, %37 : vector<1x256xi1>
    %39 = arith.extui %38 : vector<1x256xi1> to vector<1x256xi32>
    %40 = arith.sitofp %39 : vector<1x256xi32> to vector<1x256xf32>
    %c14_i32_10 = arith.constant 14 : i32
    %41 = vector.broadcast %c14_i32_10 : i32 to vector<1x256xi32>
    %42 = arith.cmpi sle, %7, %41 : vector<1x256xi32>
    %43 = arith.extui %42 : vector<1x256xi1> to vector<1x256xi32>
    %44 = arith.sitofp %43 : vector<1x256xi32> to vector<1x256xf32>
    %c14_i32_11 = arith.constant 14 : i32
    %45 = vector.broadcast %c14_i32_11 : i32 to vector<1x256xi32>
    %46 = arith.cmpi sle, %5, %45 : vector<1x256xi32>
    %c14_i32_12 = arith.constant 14 : i32
    %47 = vector.broadcast %c14_i32_12 : i32 to vector<1x256xi32>
    %48 = arith.cmpi sle, %7, %47 : vector<1x256xi32>
    %49 = arith.andi %46, %48 : vector<1x256xi1>
    %50 = arith.extui %49 : vector<1x256xi1> to vector<1x256xi32>
    %51 = arith.sitofp %50 : vector<1x256xi32> to vector<1x256xf32>
    %c0_13 = arith.constant 0 : index
    %c0_14 = arith.constant 0 : index
    %c0_15 = arith.constant 0 : index
    %52 = vector.load %arg1[%c0_13, %c0_14, %c0_15] : memref<1x4x256xf32, #tpu.memory_space<vmem>>, vector<1x4x256xf32>
    %53 = vector.shape_cast %52 : vector<1x4x256xf32> to vector<4x256xf32>
    %54 = arith.truncf %53 : vector<4x256xf32> to vector<4x256xbf16>
    %cst = arith.constant dense<0.000000e+00> : vector<72x256xf32>
    %55 = tpu.matmul %0, %54, %cst {dimension_numbers = #tpu.dot_dimension_numbers<[1], [0], [0], [1], [0, 0, 1, 1], [], []>} : vector<72x4xbf16>, vector<4x256xbf16>, vector<72x256xf32> -> vector<72x256xf32>
    %56 = vector.extract_strided_slice %55 {offsets = [32, 0], sizes = [8, 256], strides = [1, 1]} : vector<72x256xf32> to vector<8x256xf32>
    %57 = vector.extract_strided_slice %55 {offsets = [0, 0], sizes = [8, 256], strides = [1, 1]} : vector<72x256xf32> to vector<8x256xf32>
    %c17_i32 = arith.constant 17 : i32
    %58 = tpu.dynamic_rotate %57 by %c17_i32 dim 1 : vector<8x256xf32>, i32 -> vector<8x256xf32>
    %59 = vector.broadcast %14 : vector<1x256xf32> to vector<8x256xf32>
    %60 = arith.mulf %59, %58 : vector<8x256xf32>
    %61 = arith.addf %56, %60 : vector<8x256xf32>
    %62 = vector.extract_strided_slice %55 {offsets = [8, 0], sizes = [8, 256], strides = [1, 1]} : vector<72x256xf32> to vector<8x256xf32>
    %c16_i32 = arith.constant 16 : i32
    %63 = tpu.dynamic_rotate %62 by %c16_i32 dim 1 : vector<8x256xf32>, i32 -> vector<8x256xf32>
    %64 = vector.broadcast %18 : vector<1x256xf32> to vector<8x256xf32>
    %65 = arith.mulf %64, %63 : vector<8x256xf32>
    %66 = arith.addf %61, %65 : vector<8x256xf32>
    %67 = vector.extract_strided_slice %55 {offsets = [16, 0], sizes = [8, 256], strides = [1, 1]} : vector<72x256xf32> to vector<8x256xf32>
    %c15_i32_16 = arith.constant 15 : i32
    %68 = tpu.dynamic_rotate %67 by %c15_i32_16 dim 1 : vector<8x256xf32>, i32 -> vector<8x256xf32>
    %69 = vector.broadcast %25 : vector<1x256xf32> to vector<8x256xf32>
    %70 = arith.mulf %69, %68 : vector<8x256xf32>
    %71 = arith.addf %66, %70 : vector<8x256xf32>
    %72 = vector.extract_strided_slice %55 {offsets = [24, 0], sizes = [8, 256], strides = [1, 1]} : vector<72x256xf32> to vector<8x256xf32>
    %c1_i32_17 = arith.constant 1 : i32
    %73 = tpu.dynamic_rotate %72 by %c1_i32_17 dim 1 : vector<8x256xf32>, i32 -> vector<8x256xf32>
    %74 = vector.broadcast %29 : vector<1x256xf32> to vector<8x256xf32>
    %75 = arith.mulf %74, %73 : vector<8x256xf32>
    %76 = arith.addf %71, %75 : vector<8x256xf32>
    %77 = vector.extract_strided_slice %55 {offsets = [40, 0], sizes = [8, 256], strides = [1, 1]} : vector<72x256xf32> to vector<8x256xf32>
    %c255_i32 = arith.constant 255 : i32
    %78 = tpu.dynamic_rotate %77 by %c255_i32 dim 1 : vector<8x256xf32>, i32 -> vector<8x256xf32>
    %79 = vector.broadcast %33 : vector<1x256xf32> to vector<8x256xf32>
    %80 = arith.mulf %79, %78 : vector<8x256xf32>
    %81 = arith.addf %76, %80 : vector<8x256xf32>
    %82 = vector.extract_strided_slice %55 {offsets = [48, 0], sizes = [8, 256], strides = [1, 1]} : vector<72x256xf32> to vector<8x256xf32>
    %c241_i32 = arith.constant 241 : i32
    %83 = tpu.dynamic_rotate %82 by %c241_i32 dim 1 : vector<8x256xf32>, i32 -> vector<8x256xf32>
    %84 = vector.broadcast %40 : vector<1x256xf32> to vector<8x256xf32>
    %85 = arith.mulf %84, %83 : vector<8x256xf32>
    %86 = arith.addf %81, %85 : vector<8x256xf32>
    %87 = vector.extract_strided_slice %55 {offsets = [56, 0], sizes = [8, 256], strides = [1, 1]} : vector<72x256xf32> to vector<8x256xf32>
    %c240_i32 = arith.constant 240 : i32
    %88 = tpu.dynamic_rotate %87 by %c240_i32 dim 1 : vector<8x256xf32>, i32 -> vector<8x256xf32>
    %89 = vector.broadcast %44 : vector<1x256xf32> to vector<8x256xf32>
    %90 = arith.mulf %89, %88 : vector<8x256xf32>
    %91 = arith.addf %86, %90 : vector<8x256xf32>
    %92 = vector.extract_strided_slice %55 {offsets = [64, 0], sizes = [8, 256], strides = [1, 1]} : vector<72x256xf32> to vector<8x256xf32>
    %c239_i32 = arith.constant 239 : i32
    %93 = tpu.dynamic_rotate %92 by %c239_i32 dim 1 : vector<8x256xf32>, i32 -> vector<8x256xf32>
    %94 = vector.broadcast %51 : vector<1x256xf32> to vector<8x256xf32>
    %95 = arith.mulf %94, %93 : vector<8x256xf32>
    %96 = arith.addf %91, %95 : vector<8x256xf32>
    %97 = vector.broadcast %1 : vector<8x1xf32> to vector<8x256xf32>
    %98 = arith.addf %96, %97 : vector<8x256xf32>
    %cst_18 = arith.constant dense<0xFF800000> : vector<8xf32>
    %99 = vector.multi_reduction <maximumf>, %98, %cst_18 [1] : vector<8x256xf32> to vector<8xf32>
    %100 = vector.shape_cast %99 : vector<8xf32> to vector<8x1xf32>
    %101 = vector.broadcast %100 : vector<8x1xf32> to vector<8x256xf32>
    %102 = arith.cmpf oge, %98, %101 : vector<8x256xf32>
    %c256_i32 = arith.constant 256 : i32
    %103 = vector.broadcast %c256_i32 : i32 to vector<8x256xi32>
    %104 = arith.select %102, %2, %103 : vector<8x256xi1>, vector<8x256xi32>
    %cst_19 = arith.constant dense<2147483647> : vector<8xi32>
    %105 = vector.multi_reduction <minsi>, %104, %cst_19 [1] : vector<8x256xi32> to vector<8xi32>
    %106 = vector.shape_cast %105 : vector<8xi32> to vector<8x1xi32>
    %c0_20 = arith.constant 0 : index
    %c0_21 = arith.constant 0 : index
    %c0_22 = arith.constant 0 : index
    %107 = vector.load %arg5[%c0_20, %c0_21, %c0_22] : memref<1x8x1xf32, #tpu.memory_space<vmem>>, vector<1x8x1xf32>
    %108 = vector.shape_cast %107 : vector<1x8x1xf32> to vector<8x1xf32>
    %109 = vector.shape_cast %100 : vector<8x1xf32> to vector<1x8x1xf32>
    tpu.vector_store %arg5[%c0_20, %c0_21, %c0_22], %109 {strides = array<i32>} : memref<1x8x1xf32, #tpu.memory_space<vmem>>, vector<1x8x1xf32>,
    %c0_23 = arith.constant 0 : index
    %c0_24 = arith.constant 0 : index
    %c0_25 = arith.constant 0 : index
    %110 = vector.load %arg6[%c0_23, %c0_24, %c0_25] : memref<1x8x1xi32, #tpu.memory_space<vmem>>, vector<1x8x1xi32>
    %111 = vector.shape_cast %110 : vector<1x8x1xi32> to vector<8x1xi32>
    %112 = vector.shape_cast %106 : vector<8x1xi32> to vector<1x8x1xi32>
    tpu.vector_store %arg6[%c0_23, %c0_24, %c0_25], %112 {strides = array<i32>} : memref<1x8x1xi32, #tpu.memory_space<vmem>>, vector<1x8x1xi32>,
    %c0_26 = arith.constant 0 : index
    %c0_27 = arith.constant 0 : index
    %c0_28 = arith.constant 0 : index
    %113 = vector.load %arg5[%c0_26, %c0_27, %c0_28] : memref<1x8x1xf32, #tpu.memory_space<vmem>>, vector<1x8x1xf32>
    %c0_29 = arith.constant 0 : index
    %c0_30 = arith.constant 0 : index
    %c0_31 = arith.constant 0 : index
    %114 = vector.load %arg6[%c0_29, %c0_30, %c0_31] : memref<1x8x1xi32, #tpu.memory_space<vmem>>, vector<1x8x1xi32>
    %115 = arith.negf %113 : vector<1x8x1xf32>
    %116 = math.exp %115 : vector<1x8x1xf32>
    %cst_32 = arith.constant 1.000000e+00 : f32
    %117 = vector.broadcast %cst_32 : f32 to vector<1x8x1xf32>
    %118 = arith.addf %117, %116 : vector<1x8x1xf32>
    %119 = arith.divf %117, %118 : vector<1x8x1xf32>
    %c15_i32_33 = arith.constant 15 : i32
    %120 = vector.broadcast %c15_i32_33 : i32 to vector<1x8x1xi32>
    %121 = arith.andi %114, %120 : vector<1x8x1xi32>
    %122 = arith.sitofp %121 : vector<1x8x1xi32> to vector<1x8x1xf32>
    %c4_i32_34 = arith.constant 4 : i32
    %123 = vector.broadcast %c4_i32_34 : i32 to vector<1x8x1xi32>
    %124 = arith.shrsi %114, %123 : vector<1x8x1xi32>
    %125 = arith.sitofp %124 : vector<1x8x1xi32> to vector<1x8x1xf32>
    %126 = tpu.iota {dimensions = array<i32: 2>} : vector<1x8x3xi32>
    %c0_i32 = arith.constant 0 : i32
    %127 = vector.broadcast %c0_i32 : i32 to vector<1x8x3xi32>
    %128 = arith.cmpi eq, %126, %127 : vector<1x8x3xi32>
    %129 = vector.shape_cast %119 : vector<1x8x1xf32> to vector<1x8x1xf32>
    %130 = vector.broadcast %129 : vector<1x8x1xf32> to vector<1x8x3xf32>
    %c1_i32_35 = arith.constant 1 : i32
    %131 = vector.broadcast %c1_i32_35 : i32 to vector<1x8x3xi32>
    %132 = arith.cmpi eq, %126, %131 : vector<1x8x3xi32>
    %133 = vector.shape_cast %122 : vector<1x8x1xf32> to vector<1x8x1xf32>
    %134 = vector.broadcast %133 : vector<1x8x1xf32> to vector<1x8x3xf32>
    %135 = vector.shape_cast %125 : vector<1x8x1xf32> to vector<1x8x1xf32>
    %136 = vector.broadcast %135 : vector<1x8x1xf32> to vector<1x8x3xf32>
    %137 = arith.select %132, %134, %136 : vector<1x8x3xi1>, vector<1x8x3xf32>
    %138 = arith.select %128, %130, %137 : vector<1x8x3xi1>, vector<1x8x3xf32>
    %c0_36 = arith.constant 0 : index
    %c0_37 = arith.constant 0 : index
    %c0_38 = arith.constant 0 : index
    %139 = vector.load %arg4[%c0_36, %c0_37, %c0_38] : memref<1x8x3xf32, #tpu.memory_space<vmem>>, vector<1x8x3xf32>
    tpu.vector_store %arg4[%c0_36, %c0_37, %c0_38], %138 {strides = array<i32>} : memref<1x8x3xf32, #tpu.memory_space<vmem>>, vector<1x8x3xf32>,
    return
  }
  func.func @transform_0(%arg0: i32) -> (i32, i32, i32) {
    %c0_i32 = arith.constant 0 : i32
    %c0_i32_0 = arith.constant 0 : i32
    %c0_i32_1 = arith.constant 0 : i32
    return %arg0, %c0_i32, %c0_i32_0 : i32, i32, i32
  }
  func.func @transform_1(%arg0: i32) -> (i32, i32) {
    %c0_i32 = arith.constant 0 : i32
    %c0_i32_0 = arith.constant 0 : i32
    %c0_i32_1 = arith.constant 0 : i32
    return %c0_i32, %c0_i32_0 : i32, i32
  }
  func.func @transform_2(%arg0: i32) -> (i32, i32) {
    %c0_i32 = arith.constant 0 : i32
    %c0_i32_0 = arith.constant 0 : i32
    %c0_i32_1 = arith.constant 0 : i32
    return %c0_i32, %c0_i32_0 : i32, i32
  }
  func.func @transform_3(%arg0: i32) -> (i32, i32, i32) {
    %c0_i32 = arith.constant 0 : i32
    %c0_i32_0 = arith.constant 0 : i32
    %c0_i32_1 = arith.constant 0 : i32
    return %arg0, %c0_i32, %c0_i32_0 : i32, i32, i32
  }
}

</mosaic_0001>

<bundles_post_ra>
// kernel: tpu_custom_call.1
= control target key start
LH: loop header
LB: loop body
LE: loop exit
PB: predicated region body
PF: predicated region fallthrough
CT: control target
= control target key end

     0   :  { %s684_s12 = smov 0   ;;  %s857_s0 = inlined_call_operand.vmem [shape: f32[2,4,256], index: 0, kind: input, shape index: {}]   ;;  %s858_s1 = inlined_call_operand.vmem [shape: bf16[72,4], index: 1, kind: input, shape index: {}]   ;;  %s859_s2 = inlined_call_operand.vmem [shape: f32[8,1], index: 2, kind: input, shape index: {}]   ;;  %s860_s3 = inlined_call_operand.vmem [shape: f32[2,8,3], index: 3, kind: output, shape index: {}]  }
   0x1 LB: > { %s575_s13 = sadd.s32 4294967295, %s652_s12   ;;  %p579_p0 = scmp.ge.s32.totalorder %s652_s12, 1  ;;  %s652_s12 = sphi %s684_s12, %s13_s12  }
   0x2   : > { %p137_p1 = scmp.lt.s32.totalorder %s652_s12, 3 }
   0x4   : > { %p138_p2 = pnand %p579_p0, %p137_p1 }
   0x5   : > { %p160_p3 = scmp.lt.s32.totalorder (!%p138_p2), %s575_s13, 1  ;;  %s655_s28 = smov (!%p138_p2), 17  }
   0x6   : > { %141 = sbr.rel (%p138_p2) target bundleno = 946 (0x3b2), region = 32  ;;  %s656_s29 = smov (!%p138_p2), 113  }
   0x7   : > { %s657_s30 = smov (!%p138_p2), 16   ;;  %s658_s4 = smov (!%p138_p2), 112  }
   0x8   : > { %s659_s5 = smov (!%p138_p2), 15   ;;  %s660_s6 = smov (!%p138_p2), 1  }
   0x9   : > { %s661_s7 = smov (!%p138_p2), 127   ;;  %s662_s8 = smov (!%p138_p2), 111  }
   0xb   : > { %v654_v0 = vmov 0   ;;  %s878_s13 = smov (!%p160_p3, %s575_s13), 1  ;;  %vm280_vm0 = vcmask 1041408   ;;  %v637_v6 = vld [vmem:[%s858_s1] sm:$0xff]   ;;  %v638_v7 = vld [vmem:[%s858_s1 + $0x18] sm:$0xff]   ;;  %vm264_vm1 = vcmask 31744   ;;  %v180_v32 = vlaneseq }
   0xc   : > { %319 = vmatprep.mubr.bf16.mxu0 %v654_v0  ;;  %349 = vmatprep.mubr.bf16.mxu1 %v654_v0  ;;  %s613_s14 = sshll.u32 %s878_s13, 3  ;;  %v639_v8 = vld [vmem:[%s858_s1 + $0x8] sm:$0xff]   ;;  %v641_v9 = vld [vmem:[%s858_s1 + $0x20] ss:$0 sps:$4 sm:$0xff]   ;;  %v640_v10 = vld [vmem:[%s858_s1 + $0x10] sm:$0xff]   ;;  %v663_v48 = vmov 0.0  }
   0xd   : > { %634 = vset.pattern.permute.xlu0 %v654_v0  ;;  %635 = vset.pattern.permute.xlu1 %v654_v0  ;;  %s164_s17 = scalar_lea.vmem %s857_s0, %s613_s14  ;;  %v179_v31 = vld [vmem:[%s859_s2] sm:$0xff]  ;;  %v718_v33 = vand.u32 127, %v180_v32  ;;  %s168_s16 = scalar_lea.vmem %s860_s3, %s613_s14 }
   0xe   : > { %v235_v1 = vld [vmem:[%s164_s17] sm:$0xff] }
   0xf   : > { %v237_v2 = vcombine.high %v235_v1, %v235_v1  ;;  %v239_v3 = vpack.c.bf16 %v235_v1, %v235_v1  ;;  %v721_v34 = vadd.s32 128, %v718_v33  ;;  %v183_v37 = vand.u32 15, %v718_v33 }
  0x10   : > { %v185_v38 = vshra.s32 %v718_v33, 4  ;;  %vm372_vm8 = vcmp.lt.s32.totalorder %v718_v33, 17  ;;  %vm383_vm11 = vcmp.lt.s32.totalorder %v718_v33, 16  ;;  %vm394_vm14 = vcmp.lt.s32.totalorder %v718_v33, 15 }
  0x11   : > { %v240_v4 = vpack.c.bf16 %v237_v2, %v237_v2  ;;  %v282_v5 = vsel %vm280_vm0, %v239_v3, 0  ;;  %v184_v39 = vand.u32 15, %v721_v34  ;;  %v186_v40 = vshra.s32 %v721_v34, 4 }
  0x12   : > { %vm731_vm2 = vcmp.ge.s32.totalorder %v185_v38, 1  ;;  %vm739_vm4 = vcmp.ge.s32.totalorder %v183_v37, 1  ;;  %vm757_vm9 = vcmp.le.s32.totalorder %v183_v37, 14  ;;  %vm405_vm15 = vcmp.lt.s32.totalorder %v718_v33, 1 }
  0x13   : > { %604 = vmatprep.subr.msk.bf16.mxu0 %vm280_vm0, %v240_v4  ;;  %614 = vmatprep.subr.msk.bf16.mxu1 %vm280_vm0, %v240_v4  ;;  %vm735_vm3 = vcmp.ge.s32.totalorder %v186_v40, 1  ;;  %vm743_vm5 = vcmp.ge.s32.totalorder %v184_v39, 1  ;;  %vm191_vm6 = vmand %vm739_vm4, %vm731_vm2  ;;  %vm762_vm10 = vcmp.le.s32.totalorder %v184_v39, 14  ;;  %v585_v60 = vsel %vm731_vm2, 1.0, %v663_v48 }
  0x14   : > { %302 = vmatpush1.bf16.msra.mxu0 %v282_v5  ;;  %615 = vmatpush1.bf16.msra.mxu1 %v282_v5  ;;  %vm192_vm7 = vmand %vm743_vm5, %vm735_vm3  ;;  %v583_v49 = vsel %vm191_vm6, 1.0, %v663_v48  ;;  %v586_v61 = vsel %vm735_vm3, 1.0, %v663_v48  ;;  %vm793_vm0 = vcmp.le.s32.totalorder %v185_v38, 14 }
  0x15   : > { %v584_v52 = vsel %vm192_vm7, 1.0, %v663_v48  ;;  %vm203_vm12 = vmand %vm757_vm9, %vm731_vm2  ;;  %vm416_vm2 = vcmp.lt.s32.totalorder %v718_v33, 127  ;;  %vm427_vm7 = vcmp.lt.s32.totalorder %v718_v33, 113 }
  0x16   : > { %vm204_vm13 = vmand %vm762_vm10, %vm735_vm3 }
  0x17   : > { %605 = vmatmul.mubr.msk.bf16.vlgmr.msra.gmra.mxu0 %vm264_vm1, %v637_v6  ;;  %608 = vmatmul.mubr.msk.bf16.vlgmr.msra.gmra.mxu1 %vm264_vm1, %v638_v7  ;;  %v588_v2 = vsel %vm204_vm13, 1.0, %v663_v48  ;;  %vm219_vm3 = vmand %vm739_vm4, %vm793_vm0 }
  0x18   : > { %329 = vmatprep.mubr.bf16.mxu0 %v654_v0  ;;  %359 = vmatprep.mubr.bf16.mxu1 %v654_v0  ;;  %v593_v39 = vsel %vm219_vm3, 1.0, %v663_v48 }
  0x1f   : > { %606 = vmatmul.mubr.msk.bf16.gmra.mxu0 %vm264_vm1, %v639_v8  ;;  %609 = vmatmul.mubr.msk.bf16.gmra.mxu1 %vm264_vm1, %v641_v9 }
  0x20   : > { %339 = vmatprep.mubr.bf16.mxu0 %v654_v0  ;;  %v587_v0 = vsel %vm203_vm12, 1.0, %v663_v48 }
  0x27   : > { %607 = vmatmul.mubr.msk.bf16.gmra.mxu0 %vm264_vm1, %v640_v10  ;;  %v589_v10 = vsel %vm739_vm4, 1.0, %v663_v48  ;;  %vm797_vm1 = vcmp.le.s32.totalorder %v186_v40, 14  ;;  %vm438_vm4 = vcmp.lt.s32.totalorder %v718_v33, 112 }
  0x28   : > { %vm220_vm6 = vmand %vm743_vm5, %vm797_vm1 }
  0x29   : > { %v594_v40 = vsel %vm220_vm6, 1.0, %v663_v48 }
  0xd7   : > { %v321_v11 = vpop.f32.mrf.mxu0  ;;  %v351_v12 = vpop.f32.mrf.mxu1 }
  0xd8   : > { %368 = vrot.lane.b32.xlu0 %v321_v11, %s655_s28  ;;  %v590_v11 = vsel %vm743_vm5, 1.0, %v663_v48  ;;  %vm229_vm5 = vmand %vm757_vm9, %vm793_vm0 }
  0xd9   : > { %v323_v13 = vpop.f32.mrf.mxu0  ;;  %v353_v14 = vpop.f32.mrf.mxu1  ;;  %v597_v55 = vsel %vm229_vm5, 1.0, %v663_v48 }
  0xda   : > { %425 = vrot.lane.b32.xlu1 %v353_v14, %s656_s29 }
  0xdb   : > { %v325_v15 = vpop.f32.mrf.mxu0  ;;  %v355_v16 = vpop.f32.mrf.mxu1 }
  0xdc   : > { %423 = vrot.lane.b32.xlu0 %v351_v12, %s656_s29 }
  0xdd   : > { %v327_v17 = vpop.f32.mrf.mxu0  ;;  %v357_v18 = vpop.f32.mrf.mxu1 }
  0xde   : > { %379 = vrot.lane.b32.xlu1 %v325_v15, %s657_s30 }
  0xdf   : > { %v331_v19 = vpop.f32.mrf.mxu0  ;;  %v361_v20 = vpop.f32.mrf.mxu1 }
  0xe0   : > { %370 = vrot.lane.b32.xlu0 %v323_v13, %s655_s28 }
  0xe1   : > { %v333_v21 = vpop.f32.mrf.mxu0  ;;  %v363_v22 = vpop.f32.mrf.mxu1 }
  0xe2   : > { %381 = vrot.lane.b32.xlu1 %v327_v17, %s657_s30 }
  0xe3   : > { %v335_v23 = vpop.f32.mrf.mxu0  ;;  %v365_v24 = vpop.f32.mrf.mxu1 }
  0xe4   : > { %434 = vrot.lane.b32.xlu0 %v355_v16, %s658_s4  ;;  %v591_v24 = vsel %vm757_vm9, 1.0, %v663_v48  ;;  %vm486_vm9 = vcmask 7168  }
  0xe5   : > { %v337_v25 = vpop.f32.mrf.mxu0  ;;  %v366_v26 = vpop.f32.mrf.mxu1 }
  0xe6   : > { %392 = vrot.lane.b32.xlu1 %v333_v21, %s659_s5 }
  0xe7   : > { %v341_v27 = vpop.f32.mrf.mxu0 }
  0xe8   : > { %390 = vrot.lane.b32.xlu0 %v331_v19, %s659_s5 }
  0xe9   : > { %v343_v28 = vpop.f32.mrf.mxu0 }
  0xea   : > { %403 = vrot.lane.b32.xlu1 %v337_v25, %s660_s6  ;;  %v592_v25 = vsel %vm762_vm10, 1.0, %v663_v48 }
  0xeb   : > { %v345_v29 = vpop.f32.mrf.mxu0 }
  0xec   : > { %401 = vrot.lane.b32.xlu0 %v335_v23, %s660_s6 }
  0xed   : > { %v347_v30 = vpop.f32.mrf.mxu0 }
  0xee   : > { %414 = vrot.lane.b32.xlu1 %v347_v30, %s661_s7 }
  0xf0   : > { %412 = vrot.lane.b32.xlu0 %v345_v29, %s661_s7 }
  0xf2   : > { %436 = vrot.lane.b32.xlu1 %v357_v18, %s658_s4 }
  0xf4   : > { %445 = vrot.lane.b32.xlu0 %v361_v20, %s662_s8 }
  0xf6   : > { %447 = vrot.lane.b32.xlu1 %v363_v22, %s662_s8 }
  0xf8   : > { %458 = vperm.xlu0 %634, %v179_v31  }
 0x14a   : > { %v369_v35 = vpop.permute.xlu0 %368 }
 0x14c   : > { %v723_v36 = vpop.permute.xlu1 %425 }
 0x14e   : > { %v729_v41 = vpop.permute.xlu0 %423 }
 0x14f   : > { %v428_v42 = vsel %vm427_vm7, %v729_v41, %v723_v36  ;;  %v429_v43 = vsel %vm427_vm7, %v723_v36, %v729_v41  ;;  %v595_v36 = vsel %vm793_vm0, 1.0, %v663_v48  ;;  %v596_v41 = vsel %vm797_vm1, 1.0, %v663_v48 }
 0x150   : > { %v380_v45 = vpop.permute.xlu1 %379  ;;  %v430_v46 = vmul.f32 %v593_v39, %v428_v42  ;;  %vm501_vm0 = vcmp.eq.s32.totalorder %v718_v33, 0 }
 0x152   : > { %v371_v47 = vpop.permute.xlu0 %370 }
 0x153   : > { %v373_v53 = vsel %vm372_vm8, %v369_v35, %v371_v47  ;;  %v374_v54 = vsel %vm372_vm8, %v371_v47, %v369_v35  ;;  %v431_v47 = vmul.f32 %v594_v40, %v429_v43  ;;  %vm230_vm8 = vmand %vm762_vm10, %vm797_vm1  ;;  %vm520_vm1 = vcmask 23552  }
 0x154   : > { %v382_v50 = vpop.permute.xlu1 %381  ;;  %v375_v57 = vmul.f32 %v583_v49, %v374_v54  ;;  %v376_v58 = vmul.f32 %v584_v52, %v373_v53 }
 0x155   : > { %v384_v62 = vsel %vm383_vm11, %v380_v45, %v382_v50  ;;  %v385_v63 = vsel %vm383_vm11, %v382_v50, %v380_v45  ;;  %vm449_vm11 = vcmp.lt.s32.totalorder %v718_v33, 111 }
 0x156   : > { %v767_v56 = vpop.permute.xlu0 %434  ;;  %v377_v5 = vadd.f32 %v375_v57, %v341_v27  ;;  %v378_v6 = vadd.f32 %v376_v58, %v343_v28  ;;  %v386_v7 = vmul.f32 %v585_v60, %v385_v63  ;;  %v387_v8 = vmul.f32 %v586_v61, %v384_v62 }
 0x157   : > { %v598_v57 = vsel %vm230_vm8, 1.0, %v663_v48 }
 0x158   : > { %v393_v59 = vpop.permute.xlu1 %392  ;;  %v388_v19 = vadd.f32 %v386_v7, %v377_v5  ;;  %v389_v20 = vadd.f32 %v387_v8, %v378_v6 }
 0x15a   : > { %v391_v1 = vpop.permute.xlu0 %390 }
 0x15b   : > { %v395_v3 = vsel %vm394_vm14, %v391_v1, %v393_v59  ;;  %v396_v4 = vsel %vm394_vm14, %v393_v59, %v391_v1 }
 0x15c   : > { %v404_v9 = vpop.permute.xlu1 %403  ;;  %v397_v13 = vmul.f32 %v587_v0, %v396_v4  ;;  %v398_v14 = vmul.f32 %v588_v2, %v395_v3 }
 0x15e   : > { %v402_v15 = vpop.permute.xlu0 %401  ;;  %v399_v26 = vadd.f32 %v397_v13, %v388_v19  ;;  %v400_v27 = vadd.f32 %v398_v14, %v389_v20 }
 0x15f   : > { %v406_v17 = vsel %vm405_vm15, %v402_v15, %v404_v9  ;;  %v407_v18 = vsel %vm405_vm15, %v404_v9, %v402_v15  ;;  %vm507_vm15 = vcmp.eq.s32.totalorder %v718_v33, 1 }
 0x160   : > { %v408_v21 = vmul.f32 %v589_v10, %v407_v18  ;;  %v409_v22 = vmul.f32 %v590_v11, %v406_v17  ;;  %v415_v23 = vpop.permute.xlu1 %414 }
 0x162   : > { %v413_v28 = vpop.permute.xlu0 %412  ;;  %v410_v31 = vadd.f32 %v408_v21, %v399_v26  ;;  %v411_v32 = vadd.f32 %v409_v22, %v400_v27 }
 0x163   : > { %v417_v29 = vsel %vm416_vm2, %v413_v28, %v415_v23  ;;  %v418_v30 = vsel %vm416_vm2, %v415_v23, %v413_v28 }
 0x164   : > { %v419_v35 = vmul.f32 %v591_v24, %v417_v29  ;;  %v420_v37 = vmul.f32 %v592_v25, %v418_v30  ;;  %v437_v38 = vpop.permute.xlu1 %436 }
 0x165   : > { %v439_v50 = vsel %vm438_vm4, %v767_v56, %v437_v38  ;;  %v440_v51 = vsel %vm438_vm4, %v437_v38, %v767_v56 }
 0x166   : > { %v421_v44 = vadd.f32 %v419_v35, %v410_v31  ;;  %v422_v45 = vadd.f32 %v420_v37, %v411_v32  ;;  %v446_v54 = vpop.permute.xlu0 %445  ;;  %v441_v60 = vmul.f32 %v595_v36, %v439_v50  ;;  %v442_v61 = vmul.f32 %v596_v41, %v440_v51 }
 0x168   : > { %v448_v49 = vpop.permute.xlu1 %447  ;;  %v432_v52 = vadd.f32 %v430_v46, %v421_v44  ;;  %v433_v53 = vadd.f32 %v431_v47, %v422_v45 }
 0x169   : > { %v450_v58 = vsel %vm449_vm11, %v446_v54, %v448_v49  ;;  %v451_v59 = vsel %vm449_vm11, %v448_v49, %v446_v54 }
 0x16a   : > { %v443_v62 = vadd.f32 %v441_v60, %v432_v52  ;;  %v444_v63 = vadd.f32 %v442_v61, %v433_v53  ;;  %v452_v0 = vmul.f32 %v597_v55, %v450_v58  ;;  %v453_v1 = vmul.f32 %v598_v57, %v451_v59 }
 0x16c   : > { %v454_v2 = vadd.f32 %v452_v0, %v443_v62  ;;  %v455_v3 = vadd.f32 %v453_v1, %v444_v63 }
 0x173   : > { %v459_v4 = vpop.permute.xlu0 %458 }
 0x174   : > { %v461_v5 = vadd.f32 %v459_v4, %v454_v2  ;;  %v462_v56 = vadd.f32 %v459_v4, %v455_v3 }
 0x176   : > { %v463_v6 = vmax.f32 %v461_v5, %v462_v56 }
 0x178   : > { %464 = vmax.xlane.f32.xlu1 %v463_v6 }
 0x201   : > { %v465_v7 = vpop.xlane.xlu1 %464 }
 0x202   : > { %vm466_vm10 = vcmp.ge.f32.partialorder %v461_v5, %v465_v7  ;;  %vm467_vm12 = vcmp.ge.f32.partialorder %v462_v56, %v465_v7  ;;  %487 = vst.msk [vmem:[#allocation2] sm:$0xff] %vm486_vm9, %v465_v7 }
 0x203   : > { %v468_v48 = vsel %vm466_vm10, %v718_v33, 256  ;;  %v469_v8 = vsel %vm467_vm12, %v721_v34, 256 }
 0x204   : > { %vm470_vm13 = vcmp.lt.s32.totalorder %v468_v48, %v469_v8 }
 0x205   : > { %v471_v9 = vsel %vm470_vm13, %v468_v48, %v469_v8 }
 0x206   : > { %v473_v10 = vshra.s32 %v471_v9, 16  ;;  %v472_v12 = vand.u32 65535, %v471_v9 }
 0x208   : > { %v475_v11 = vcvt.s32.f32 %v473_v10  ;;  %v474_v14 = vcvt.s32.f32 %v472_v12 }
 0x209   : > { %v489_v16 = vld [vmem:[#allocation2] sm:$0xff] }
 0x20a   : > { %476 = vmin.xlane.f32.xlu0 %v475_v11  ;;  %v610_v17 = vmul.f32 -1.442695, %v489_v16 }
 0x20c   : > { %642 = vpow2.f32 %v610_v17 }
 0x219   : > { %v643_v19 = vpop.eup %642 }
 0x21a   : > { %v494_v23 = vadd.f32 1.0, %v643_v19 }
 0x21c   : > { %644 = vrcp.f32 %v494_v23 }
 0x229   : > { %v645_v29 = vpop.eup %644 }
 0x293   : > { %v477_v13 = vpop.xlane.xlu0 %476 }
 0x294   : > { %vm478_vm14 = vcmp.eq.f32.partialorder %v475_v11, %v477_v13  ;;  %v483_v18 = vcvt.f32.s32 %v477_v13 }
 0x295   : > { %v479_v15 = vsel %vm478_vm14, %v474_v14, inf }
 0x296   : > { %480 = vmin.xlane.f32.xlu1 %v479_v15  ;;  %v484_v21 = vshll.u32 %v483_v18, 16 }
 0x31f   : > { %v481_v20 = vpop.xlane.xlu1 %480 }
 0x320   : > { %v482_v22 = vcvt.f32.s32 %v481_v20 }
 0x322   : > { %v485_v34 = vadd.s32 %v484_v21, %v482_v22 }
 0x324   : > { %488 = vst.msk [vmem:[#allocation3] sm:$0xff] %vm486_vm9, %v485_v34 }
 0x32b   : > { %v490_v24 = vld [vmem:[#allocation3] sm:$0xff] }
 0x32c   : > { %v499_v25 = vshra.s32 %v490_v24, 4  ;;  %v497_v26 = vand.u32 15, %v490_v24 }
 0x32e   : > { %v500_v27 = vcvt.s32.f32 %v499_v25  ;;  %v498_v28 = vcvt.s32.f32 %v497_v26 }
 0x330   : > { %515 = vperm.xlu1 %635, %v500_v27   ;;  %510 = vperm.xlu0 %634, %v498_v28  }
 0x334   : > { %504 = vperm.xlu1 %635, %v645_v29  }
 0x3ab   : > { %v516_v30 = vpop.permute.xlu1 %515  ;;  %v511_v31 = vpop.permute.xlu0 %510 }
 0x3ac   : > { %v518_v32 = vsel %vm507_vm15, %v511_v31, %v516_v30 }
 0x3af   : > { %v505_v35 = vpop.permute.xlu1 %504 }
 0x3b0   : > { %v519_v37 = vsel %vm501_vm0, %v505_v35, %v518_v32 }
 0x3b1   : > { %521 = vst.msk [vmem:[%s168_s16] sm:$0xff] %vm520_vm1, %v519_v37 }
 0x3b2 PF: > { %s13_s12 = sadd.s32 1, %s652_s12  }
 0x3b3   : > { %p10_p4 = scmp.ge.s32.totalorder %s13_s12, 4  }
 0x3b5   :  { %12 = sbr.rel (!%p10_p4) target bundleno = 1 (0x1), region = 62 }

</bundles_post_ra>
